<compile_context>
chip_gen: v7x
topology: tpu7x:2x2x1
jax: 0.10.0
libtpu: 0.0.40
codegen_flags: <defaults>
</compile_context>

<pallas_src>
import jax
import jax.numpy as jnp
import numpy as np
from jax.experimental import pallas as pl
from jax.experimental.pallas import tpu as pltpu

# ---- static configuration (mirrors the cfg.* fields the module reads) ----
NUM_BONE = 8           # cfg.PREDICTION.BODY_SCALE_UNIQUE_NUMS
NUM_COORD = 18         # len(cfg.PREDICTION.COORDINATES)
NUM_BODY = 10          # bodies produced by OpenSimScaleLayer
ACT_TYPE = 0           # cfg.LAYER.OS_TRANSIT.ACT_TYPE (0 = tanh, 1 = sigmoid*2-1)
C_TOTAL = 6 + NUM_BONE + NUM_COORD      # 32 channels total
LANES = 128                             # packed, lane-dense output width


def _make_kernel(ns, nt_total, need_guard, act_type):
    """Build the tiled-reduction kernel for a fixed grid layout."""

    def kernel(x_ref, affine_ref, out_ref, acc_raw, acc_act):
        p = pl.program_id(0)          # parallel spatial chunk (one per TC on v7x)
        s = pl.program_id(1)          # sequential spatial tile inside the chunk

        @pl.when(s == 0)
        def _init():
            acc_raw[...] = jnp.zeros_like(acc_raw)
            acc_act[...] = jnp.zeros_like(acc_act)

        def _accumulate():
            # (B, C, TS): spatial on lanes, channels on sublanes.
            # Cast per tile; accumulation stays f32 (bf16 inputs supported).
            x = x_ref[...].astype(jnp.float32)
            if act_type == 0:
                # NOTE: tanh is applied to all 32 channels (incl. the 6 root
                # channels that are discarded) to keep sublane slices 8-aligned;
                # the root-vs-body select happens on the pooled result below.
                act = jnp.tanh(x)
            elif act_type == 1:
                act = jax.nn.sigmoid(x) * 2.0 - 1.0
            else:
                raise ValueError("bad ACT_TYPE")
            # Raw sum only needed for root channels 0..5; accumulate the
            # 8-sublane-aligned low group to avoid any per-element select.
            acc_raw[...] += jnp.sum(x[:, 0:8, :], axis=-1)
            acc_act[...] += jnp.sum(act, axis=-1)

        if need_guard:
            # Uneven chunk split: the clamped/replayed tail tile is skipped.
            pl.when(p * ns + s < nt_total)(_accumulate)
        else:
            _accumulate()

        @pl.when(s == ns - 1)
        def _finalize():
            b = acc_act.shape[0]
            raw = acc_raw[...]                                    # (B, 8)
            act = acc_act[...]                                    # (B, C_TOTAL)
            raw128 = jnp.concatenate(
                [raw, jnp.zeros((b, LANES - raw.shape[1]), jnp.float32)], axis=-1)
            act128 = jnp.concatenate(
                [act, jnp.zeros((b, LANES - act.shape[1]), jnp.float32)], axis=-1)
            lane = jax.lax.broadcasted_iota(jnp.int32, (b, LANES), 1)
            pooled = jnp.where(lane < 6, raw128, act128)          # tiny select
            # affine rows already hold (offset / NP, scale / S): partial slots
            # from the parallel chunks sum exactly to the final affined mean.
            out_ref[0] = pooled * affine_ref[1:2, :] + affine_ref[0:1, :]

    return kernel


def _choose_spatial_tile(s_total, batch, chans, target_bytes=2 * 1024 * 1024):
    """Largest multiple-of-128 divisor of S with <= target bytes per input
    buffer, preferring tilings with >= 2 tiles (pipelining + TC parallelism)."""
    if s_total % 128 != 0:
        return s_total                      # fallback: single full-S block
    divs = [d for d in range(128, s_total + 1, 128) if s_total % d == 0]
    fit = [d for d in divs if batch * chans * d * 4 <= target_bytes] or [128]
    multi = [d for d in fit if s_total // d >= 2]
    return max(multi) if multi else max(fit)


def _convert_6d_to_mat(v):
    # Representation6D.convert_6d_vectors_to_mat (Zhou et al. 6D rep).
    # TODO(synk): source of Representation6D not provided; b1/b2/b3 stacked as
    # matrix columns here — verify row/column convention against the original.
    a1, a2 = v[:, 0:3], v[:, 3:6]
    b1 = a1 / jnp.linalg.norm(a1, axis=-1, keepdims=True)
    b2 = a2 - jnp.sum(b1 * a2, axis=-1, keepdims=True) * b1
    b2 = b2 / jnp.linalg.norm(b2, axis=-1, keepdims=True)
    b3 = jnp.cross(b1, b2)
    return jnp.stack([b1, b2, b3], axis=-1)                    # (B, 3, 3)


def opensim_transition_forward(x_ncdhw, body_scale_range, coord_range, scale_map):
    B, C, D, H, W = x_ncdhw.shape
    assert C == C_TOTAL
    S = D * H * W
    # Free reshape (no transpose / extra HBM pass); keep the producer's dtype
    # (bf16 halves HBM bytes on this read-bandwidth-bound kernel).
    xr = x_ncdhw.reshape(B, C, S)

    TS = _choose_spatial_tile(S, B, C)
    NT = -(-S // TS)                       # number of spatial tiles
    NP = 2 if NT >= 2 else 1               # parallel chunks (one per v7x TC)
    NS = -(-NT // NP)                      # sequential tiles per chunk
    need_guard = (NT % NP) != 0

    # Affine rows padded to 128 lanes:
    #   [identity(6) | bone(8) | coord(18) | zeros(96)]
    # with the 1/S (mean) and 1/NP (offset split) factors pre-folded so each
    # parallel chunk's partial output simply sums to the final result.
    pad = LANES - C_TOTAL
    offset = jnp.concatenate([jnp.zeros((6,), jnp.float32),
                              body_scale_range[:, 0].astype(jnp.float32),
                              coord_range[:, 0].astype(jnp.float32),
                              jnp.zeros((pad,), jnp.float32)]) / NP
    scale = jnp.concatenate([jnp.ones((6,), jnp.float32),
                             body_scale_range[:, 1].astype(jnp.float32),
                             coord_range[:, 1].astype(jnp.float32),
                             jnp.zeros((pad,), jnp.float32)]) / S
    affine = jnp.stack([offset, scale], axis=0)                # (2, 128)

    def x_index_map(p, s):
        t = p * NS + s
        if need_guard:
            t = jnp.minimum(t, NT - 1)     # replayed tail tile is skipped in-kernel
        return (0, 0, t)

    kernel = _make_kernel(NS, NT, need_guard, ACT_TYPE)

    cost = pl.CostEstimate(
        flops=2 * B * C_TOTAL * S,
        transcendentals=B * C_TOTAL * S,
        bytes_accessed=B * C_TOTAL * S * xr.dtype.itemsize + NP * B * LANES * 4,
    )

    partial = pl.pallas_call(
        kernel,
        out_shape=jax.ShapeDtypeStruct((NP, B, LANES), jnp.float32),
        grid=(NP, NS),
        in_specs=[
            # (B, C, TS): C=32 on sublanes (multiple of 8), TS on lanes
            # (multiple of 128 or the full S).  Double-buffered by Pallas.
            pl.BlockSpec((B, C, TS), x_index_map),
            # constant block index -> resident, DMA'd once (not re-pipelined)
            pl.BlockSpec((2, LANES), lambda p, s: (0, 0)),
        ],
        # One lane-dense unmasked (B, 128) store per parallel chunk.
        out_specs=pl.BlockSpec((1, B, LANES), lambda p, s: (p, 0, 0)),
        scratch_shapes=[pltpu.VMEM((B, 8), jnp.float32),        # raw (root) sum
                        pltpu.VMEM((B, C_TOTAL), jnp.float32)], # activated sum
        compiler_params=pltpu.CompilerParams(
            dimension_semantics=("parallel", "arbitrary"),
            vmem_limit_bytes=32 * 1024 * 1024),
        cost_estimate=cost,
    )(xr, affine)

    out = jnp.sum(partial, axis=0)                             # (B, LANES)
    root6 = out[:, :6]                                         # (B, 6)
    pred_bone = out[:, 6:6 + NUM_BONE]                         # (B, NUM_BONE)
    pred_rot = out[:, 6 + NUM_BONE:6 + NUM_BONE + NUM_COORD]   # (B, NUM_COORD)

    # OpenSimScaleLayer: tiny one-hot gather, hoisted out of the kernel.
    # TODO(synk): OpenSimScaleLayer source not provided; implemented as a
    # deterministic one-hot gather (unique bone scale -> per-body xyz scale).
    pred_bone_scale = (pred_bone @ scale_map.astype(jnp.float32)).reshape(B, NUM_BODY, 3)

    # glue: 6D -> rotation matrix -> 4x4 homogeneous (a few dozen scalars/batch)
    R = _convert_6d_to_mat(root6)
    root_rot = (jnp.zeros((B, 4, 4), jnp.float32)
                .at[:, :3, :3].set(R)
                .at[:, 3, 3].set(1.0))

    return {'predBoneScale': pred_bone_scale, 'predRot': pred_rot, 'rootRot': root_rot}


def _reference(x, bsr, cvr, scale_map):
    # pure-JAX mirror of the PyTorch forward, for validation
    B = x.shape[0]
    root6 = jnp.mean(x[:, :6], axis=(2, 3, 4))
    body = x[:, 6:]
    if ACT_TYPE == 0:
        pooled = jnp.mean(jnp.tanh(body), axis=(2, 3, 4))
    elif ACT_TYPE == 1:
        pooled = jnp.mean(jax.nn.sigmoid(body) * 2.0 - 1.0, axis=(2, 3, 4))
    else:
        raise ValueError("bad ACT_TYPE")
    bone = pooled[:, :NUM_BONE] * bsr[:, 1] + bsr[:, 0]
    rot = pooled[:, NUM_BONE:] * cvr[:, 1] + cvr[:, 0]
    bone_full = (bone @ scale_map).reshape(B, NUM_BODY, 3)
    R = _convert_6d_to_mat(root6)
    H4 = jnp.zeros((B, 4, 4)).at[:, :3, :3].set(R).at[:, 3, 3].set(1.0)
    return {'predBoneScale': bone_full, 'predRot': rot, 'rootRot': H4}


if __name__ == "__main__":
    key = jax.random.PRNGKey(0)
    B, D, H, W = 2, 4, 8, 8                       # S = 256 -> TS=128, 2 parallel chunks
    x = jax.random.normal(key, (B, C_TOTAL, D, H, W), dtype=jnp.float32)

    # deterministic "parameters" (buffers of the module)
    body_scale_range = jnp.stack(
        [1.0 + 0.01 * jnp.arange(NUM_BONE, dtype=jnp.float32),      # offset
         jnp.full((NUM_BONE,), 0.3, dtype=jnp.float32)], axis=-1)   # scale
    coord_range = jnp.stack(
        [0.05 * jnp.arange(NUM_COORD, dtype=jnp.float32),           # offset
         jnp.full((NUM_COORD,), 1.5, dtype=jnp.float32)], axis=-1)  # scale

    mapping = np.arange(NUM_BODY * 3) % NUM_BONE
    scale_map = jnp.asarray(np.eye(NUM_BONE, dtype=np.float32)[:, mapping])

    fwd = jax.jit(opensim_transition_forward)
    out = fwd(x, body_scale_range, coord_range, scale_map)
    out = jax.tree_util.tree_map(jax.block_until_ready, out)

    ref = _reference(x, body_scale_range, coord_range, scale_map)
    for k in ('predBoneScale', 'predRot', 'rootRot'):
        np.testing.assert_allclose(np.asarray(out[k]), np.asarray(ref[k]),
                                   rtol=1e-4, atol=1e-4)
    print("KERNEL_OK")
</pallas_src>

<mosaic_0001>
module attributes {stable_mosaic.version = 11 : i64} {
  func.func @kernel(%arg0: i32, %arg1: i32, %arg2: memref<2x32x128xf32, #tpu.memory_space<vmem>>, %arg3: memref<2x128xf32, #tpu.memory_space<vmem>>, %arg4: memref<1x2x128xf32, #tpu.memory_space<vmem>>, %arg5: memref<2x8xf32, #tpu.memory_space<vmem>>, %arg6: memref<2x32xf32, #tpu.memory_space<vmem>>) attributes {dimension_semantics = [#tpu.dimension_semantics<parallel>, #tpu.dimension_semantics<arbitrary>], iteration_bounds = array<i64: 2, 1>, scalar_prefetch = 0 : i64, scratch_operands = 2 : i64, tpu.core_type = #tpu.core_type<tc>, window_params = [{transform_indices = @transform_0, window_bounds = array<i64: 2, 32, 128>}, {pipeline_mode = #tpu.pipeline_mode<synchronous>, transform_indices = @transform_1, window_bounds = array<i64: 2, 128>}, {transform_indices = @transform_2, window_bounds = array<i64: 1, 2, 128>}]} {
    %c0_i32 = arith.constant 0 : i32
    %0 = arith.cmpi eq, %arg1, %c0_i32 : i32
    %1 = arith.extui %0 : i1 to i32
    %c0_i32_0 = arith.constant 0 : i32
    %2 = arith.cmpi ne, %1, %c0_i32_0 : i32
    scf.if %2 {
      %cst_14 = arith.constant 0.000000e+00 : f32
      %17 = vector.broadcast %cst_14 : f32 to vector<2x8xf32>
      %c0_15 = arith.constant 0 : index
      %c0_16 = arith.constant 0 : index
      %18 = vector.load %arg5[%c0_15, %c0_16] : memref<2x8xf32, #tpu.memory_space<vmem>>, vector<2x8xf32>
      tpu.vector_store %arg5[%c0_15, %c0_16], %17 {strides = array<i32>} : memref<2x8xf32, #tpu.memory_space<vmem>>, vector<2x8xf32>,
      %cst_17 = arith.constant 0.000000e+00 : f32
      %19 = vector.broadcast %cst_17 : f32 to vector<2x32xf32>
      %c0_18 = arith.constant 0 : index
      %c0_19 = arith.constant 0 : index
      %20 = vector.load %arg6[%c0_18, %c0_19] : memref<2x32xf32, #tpu.memory_space<vmem>>, vector<2x32xf32>
      tpu.vector_store %arg6[%c0_18, %c0_19], %19 {strides = array<i32>} : memref<2x32xf32, #tpu.memory_space<vmem>>, vector<2x32xf32>,
    } else {
    }
    %c0 = arith.constant 0 : index
    %c0_1 = arith.constant 0 : index
    %c0_2 = arith.constant 0 : index
    %3 = vector.load %arg2[%c0, %c0_1, %c0_2] : memref<2x32x128xf32, #tpu.memory_space<vmem>>, vector<2x32x128xf32>
    %4 = math.tanh %3 : vector<2x32x128xf32>
    %c0_3 = arith.constant 0 : index
    %c0_4 = arith.constant 0 : index
    %5 = vector.load %arg5[%c0_3, %c0_4] : memref<2x8xf32, #tpu.memory_space<vmem>>, vector<2x8xf32>
    %6 = vector.extract_strided_slice %3 {offsets = [0, 0, 0], sizes = [2, 8, 128], strides = [1, 1, 1]} : vector<2x32x128xf32> to vector<2x8x128xf32>
    %cst = arith.constant dense<0.000000e+00> : vector<2x8xf32>
    %7 = vector.multi_reduction <add>, %6, %cst [2] : vector<2x8x128xf32> to vector<2x8xf32>
    %8 = arith.addf %5, %7 : vector<2x8xf32>
    %c0_5 = arith.constant 0 : index
    %c0_6 = arith.constant 0 : index
    %9 = vector.load %arg5[%c0_5, %c0_6] : memref<2x8xf32, #tpu.memory_space<vmem>>, vector<2x8xf32>
    tpu.vector_store %arg5[%c0_5, %c0_6], %8 {strides = array<i32>} : memref<2x8xf32, #tpu.memory_space<vmem>>, vector<2x8xf32>,
    %c0_7 = arith.constant 0 : index
    %c0_8 = arith.constant 0 : index
    %10 = vector.load %arg6[%c0_7, %c0_8] : memref<2x32xf32, #tpu.memory_space<vmem>>, vector<2x32xf32>
    %cst_9 = arith.constant dense<0.000000e+00> : vector<2x32xf32>
    %11 = vector.multi_reduction <add>, %4, %cst_9 [2] : vector<2x32x128xf32> to vector<2x32xf32>
    %12 = arith.addf %10, %11 : vector<2x32xf32>
    %c0_10 = arith.constant 0 : index
    %c0_11 = arith.constant 0 : index
    %13 = vector.load %arg6[%c0_10, %c0_11] : memref<2x32xf32, #tpu.memory_space<vmem>>, vector<2x32xf32>
    tpu.vector_store %arg6[%c0_10, %c0_11], %12 {strides = array<i32>} : memref<2x32xf32, #tpu.memory_space<vmem>>, vector<2x32xf32>,
    %c0_i32_12 = arith.constant 0 : i32
    %14 = arith.cmpi eq, %arg1, %c0_i32_12 : i32
    %15 = arith.extui %14 : i1 to i32
    %c0_i32_13 = arith.constant 0 : i32
    %16 = arith.cmpi ne, %15, %c0_i32_13 : i32
    scf.if %16 {
      %c0_14 = arith.constant 0 : index
      %c0_15 = arith.constant 0 : index
      %17 = vector.load %arg5[%c0_14, %c0_15] : memref<2x8xf32, #tpu.memory_space<vmem>>, vector<2x8xf32>
      %c0_16 = arith.constant 0 : index
      %c0_17 = arith.constant 0 : index
      %18 = vector.load %arg6[%c0_16, %c0_17] : memref<2x32xf32, #tpu.memory_space<vmem>>, vector<2x32xf32>
      %cst_18 = arith.constant 0.000000e+00 : f32
      %19 = vector.broadcast %cst_18 : f32 to vector<2x120xf32>
      %20 = tpu.concatenate %17, %19 in 1 : vector<2x8xf32>, vector<2x120xf32> -> vector<2x128xf32>
      %cst_19 = arith.constant 0.000000e+00 : f32
      %21 = vector.broadcast %cst_19 : f32 to vector<2x96xf32>
      %22 = tpu.concatenate %18, %21 in 1 : vector<2x32xf32>, vector<2x96xf32> -> vector<2x128xf32>
      %23 = tpu.iota {dimensions = array<i32: 1>} : vector<2x128xi32>
      %c6_i32 = arith.constant 6 : i32
      %24 = vector.broadcast %c6_i32 : i32 to vector<2x128xi32>
      %25 = arith.cmpi slt, %23, %24 : vector<2x128xi32>
      %26 = arith.select %25, %20, %22 : vector<2x128xi1>, vector<2x128xf32>
      %c1 = arith.constant 1 : index
      %c0_20 = arith.constant 0 : index
      %27 = vector.load %arg3[%c1, %c0_20] : memref<2x128xf32, #tpu.memory_space<vmem>>, vector<1x128xf32>
      %28 = vector.broadcast %27 : vector<1x128xf32> to vector<2x128xf32>
      %29 = arith.mulf %26, %28 : vector<2x128xf32>
      %c0_21 = arith.constant 0 : index
      %c0_22 = arith.constant 0 : index
      %30 = vector.load %arg3[%c0_21, %c0_22] : memref<2x128xf32, #tpu.memory_space<vmem>>, vector<1x128xf32>
      %31 = vector.broadcast %30 : vector<1x128xf32> to vector<2x128xf32>
      %32 = arith.addf %29, %31 : vector<2x128xf32>
      %c0_23 = arith.constant 0 : index
      %c0_24 = arith.constant 0 : index
      %c0_25 = arith.constant 0 : index
      %33 = vector.load %arg4[%c0_23, %c0_24, %c0_25] : memref<1x2x128xf32, #tpu.memory_space<vmem>>, vector<1x2x128xf32>
      %34 = vector.shape_cast %33 : vector<1x2x128xf32> to vector<2x128xf32>
      %35 = vector.shape_cast %32 : vector<2x128xf32> to vector<1x2x128xf32>
      tpu.vector_store %arg4[%c0_23, %c0_24, %c0_25], %35 {strides = array<i32>} : memref<1x2x128xf32, #tpu.memory_space<vmem>>, vector<1x2x128xf32>,
    } else {
    }
    return
  }
  func.func @transform_0(%arg0: i32, %arg1: i32) -> (i32, i32, i32) {
    %c1_i32 = arith.constant 1 : i32
    %0 = arith.muli %arg0, %c1_i32 : i32
    %1 = arith.addi %0, %arg1 : i32
    %c0_i32 = arith.constant 0 : i32
    %c0_i32_0 = arith.constant 0 : i32
    %c0_i32_1 = arith.constant 0 : i32
    return %c0_i32, %c0_i32_0, %1 : i32, i32, i32
  }
  func.func @transform_1(%arg0: i32, %arg1: i32) -> (i32, i32) {
    %c0_i32 = arith.constant 0 : i32
    %c0_i32_0 = arith.constant 0 : i32
    %c0_i32_1 = arith.constant 0 : i32
    return %c0_i32, %c0_i32_0 : i32, i32
  }
  func.func @transform_2(%arg0: i32, %arg1: i32) -> (i32, i32, i32) {
    %c0_i32 = arith.constant 0 : i32
    %c0_i32_0 = arith.constant 0 : i32
    %c0_i32_1 = arith.constant 0 : i32
    return %arg0, %c0_i32, %c0_i32_0 : i32, i32, i32
  }
}

</mosaic_0001>

<bundles_post_ra>
// kernel: opensim_transition_forward.1
= control target key start
LH: loop header
LB: loop body
LE: loop exit
PB: predicated region body
PF: predicated region fallthrough
CT: control target
= control target key end

     0   :  { %s559_s9 = smov 0   ;;  %s561_s10 = smov 0   ;;  %s635_s0 = inlined_call_operand.vmem [shape: f32[2,32,256], index: 0, kind: input, shape index: {}]   ;;  %s636_s1 = inlined_call_operand.vmem [shape: f32[2,128], index: 1, kind: input, shape index: {}]   ;;  %s637_s2 = inlined_call_operand.vmem [shape: f32[2,2,128], index: 2, kind: output, shape index: {}]  }
   0x1   :  { %s563_s11 = smov 0   ;;  %s565_s12 = smov 0  }
   0x2   :  { %s567_s13 = smov 0  }
   0x3 LB: > { %s24_s14 = sadd.s32 1, %s537_s12  ;;  %p40_p1 = scmp.ne.s32.totalorder %s529_s10, %s525_s9  ;;  %s541_s13 = sphi %s567_s13, %s12_s13   ;;  %s537_s12 = sphi %s565_s12, %s641_s12   ;;  %s533_s11 = sphi %s563_s11, %s640_s11   ;;  %s529_s10 = sphi %s561_s10, %s639_s10   ;;  %s525_s9 = sphi %s559_s9, %s638_s9  }
   0x4   : > { %p26_p0 = scmp.ge.s32.totalorder %s24_s14, 2  ;;  %p41_p2 = scmp.eq.s32.totalorder %s541_s13, 0 }
   0x5   : > { %s33_s16 = sadd.s32 1, %s529_s10  ;;  %p436_p5 = scmp.ge.s32.totalorder %s541_s13, 2 }
   0x6   : > { %s643_s14 = smov (%p26_p0, %s24_s14), 0  ;;  %p42_p3 = por %p41_p2, %p40_p1 }
   0x7   : > { %s30_s15 = ssub.s32 %s537_s12, %s643_s14  ;;  %116 = sbr.rel (%p436_p5) target bundleno = 22 (0x16), region = 20 }
   0x8   : > { %p31_p4 = scmp.eq.s32.totalorder %s30_s15, 0 }
   0xa   : > { %s594_s17 = scalar_select %p31_p4, %s529_s10, %s33_s16  }
   0xe   : > { %119 = sbr.rel (!%p42_p3) target bundleno = 22 (0x16), region = 24  ;;  %s121_s18 = sand.u32 (%p42_p3), 1, %s529_s10  }
   0xf   : > { %s438_s19 = sshll.u32 (%p42_p3), %s537_s12, 3  ;;  %s437_s20 = sshll.u32 (%p42_p3), %s121_s18, 6 }
  0x10   : > { %s126_s23 = scalar_lea.vmem (%p42_p3), %s635_s0, %s438_s19  ;;  %s123_s24 = scalar_lea.vmem (%p42_p3), [#allocation4], %s437_s20 }
  0x11   : > { %v168_v0 = vld [vmem:[%s126_s23] sm:$0xff] (%p42_p3)  ;;  %v170_v1 = vld [vmem:[%s126_s23 + $0x10] sm:$0xff] (%p42_p3) }
  0x12   : > { %v172_v2 = vld [vmem:[%s126_s23 + $0x20] sm:$0xff] (%p42_p3)  ;;  %169 = vst [vmem:[%s123_s24] sm:$0xff] (%p42_p3), %v168_v0  ;;  %171 = vst [vmem:[%s123_s24 + $0x8] sm:$0xff] (%p42_p3), %v170_v1  ;;  %v174_v3 = vld [vmem:[%s126_s23 + $0x30] sm:$0xff] (%p42_p3) }
  0x13   : > { %173 = vst [vmem:[%s123_s24 + $0x10] sm:$0xff] (%p42_p3), %v172_v2  ;;  %v176_v4 = vld [vmem:[%s126_s23 + $0x40] sm:$0xff] (%p42_p3)  ;;  %v178_v5 = vld [vmem:[%s126_s23 + $0x50] sm:$0xff] (%p42_p3)  ;;  %175 = vst [vmem:[%s123_s24 + $0x18] sm:$0xff] (%p42_p3), %v174_v3 }
  0x14   : > { %177 = vst [vmem:[%s123_s24 + $0x20] sm:$0xff] (%p42_p3), %v176_v4  ;;  %179 = vst [vmem:[%s123_s24 + $0x28] sm:$0xff] (%p42_p3), %v178_v5  ;;  %v180_v6 = vld [vmem:[%s126_s23 + $0x60] sm:$0xff] (%p42_p3)  ;;  %v182_v7 = vld [vmem:[%s126_s23 + $0x70] sm:$0xff] (%p42_p3) }
  0x15   : > { %181 = vst [vmem:[%s123_s24 + $0x30] sm:$0xff] %v180_v6  ;;  %183 = vst [vmem:[%s123_s24 + $0x38] sm:$0xff] %v182_v7 }
  0x16 PF: > { %p439_p6 = scmp.ge.s32.totalorder %s541_s13, 1  ;;  %p188_p7 = scmp.lt.s32.totalorder %s541_s13, 3 }
  0x18   : > { %p189_p8 = pnand %p439_p6, %p188_p7 }
  0x19   : > { %s195_s25 = sand.u32 (!%p189_p8), 1, %s525_s9   ;;  %vm226_vm0 = vcmask (!%p189_p8), 254976   ;;  %v543_v24 = vmov (!%p189_p8), 0.0   ;;  %vm224_vm1 = vcmask (!%p189_p8), 58368   ;;  %v251_v25 = vlaneseq (!%p189_p8)  ;;  %p216_p9 = scmp.lt.s32.totalorder (!%p189_p8), %s533_s11, 1 }
  0x1a   : > { %192 = sbr.rel (%p189_p8) target bundleno = 219 (0xdb), region = 62  ;;  %s440_s26 = sshll.u32 (!%p189_p8), %s195_s25, 6  ;;  %227 = vst.msk [vmem:[#allocation3] sm:$0x3] (!%p189_p8), %vm226_vm0, %v543_v24  ;;  %vm301_vm2 = vcmask (!%p189_p8), 130112   ;;  %vm308_vm3 = vcmask (!%p189_p8), 195712  }
  0x1b   : > { %s197_s27 = scalar_lea.vmem (!%p189_p8), [#allocation4], %s440_s26  ;;  %225 = vst.msk [vmem:[#allocation2] sm:$0x3] (!%p189_p8), %vm224_vm1, %v543_v24  ;;  %v252_v26 = vand.u32 (!%p189_p8), 127, %v251_v25  ;;  %v254_v31 = vshrl.u32 (!%p189_p8), %v251_v25, 7  ;;  %vm315_vm4 = vcmask (!%p189_p8), 261312  }
  0x1c   : > { %v232_v8 = vld [vmem:[%s197_s27 + $0x20] sm:$0xff] (!%p189_p8)  ;;  %v233_v10 = vld [vmem:[%s197_s27 + $0x28] sm:$0xff] (!%p189_p8)  ;;  %v234_v12 = vld [vmem:[%s197_s27 + $0x30] sm:$0xff] (!%p189_p8)  ;;  %vm261_vm5 = vcmask (!%p189_p8), 1041409   ;;  %vm348_vm6 = vcmask (!%p189_p8), 261120   ;;  %vm346_vm7 = vcmask (!%p189_p8), 64512  }
  0x1d   : > { %v228_v9 = vld [vmem:[%s197_s27] sm:$0xff] (!%p189_p8)  ;;  %487 = vtanh.f32 (!%p189_p8), %v232_v8  ;;  %v229_v11 = vld [vmem:[%s197_s27 + $0x8] sm:$0xff] (!%p189_p8)  ;;  %v230_v13 = vld [vmem:[%s197_s27 + $0x10] sm:$0xff] (!%p189_p8)  ;;  %v296_v29 = vadd.s32 (!%p189_p8), 4294967288, %v252_v26  ;;  %v303_v30 = vadd.s32 (!%p189_p8), 4294967280, %v252_v26  ;;  %v310_v35 = vadd.s32 (!%p189_p8), 4294967272, %v252_v26 }
  0x1e   : > { %489 = vtanh.f32 (!%p189_p8), %v228_v9  ;;  %v235_v14 = vld [vmem:[%s197_s27 + $0x38] sm:$0xff] (!%p189_p8)  ;;  %v255_v37 = vsub.s32 (!%p189_p8), %v252_v26, %v254_v31  ;;  %vm350_vm8 = vcmp.lt.s32.totalorder (!%p189_p8), %v252_v26, 6 }
  0x1f   : > { %491 = vtanh.f32 (!%p189_p8), %v233_v10  ;;  %v231_v15 = vld [vmem:[%s197_s27 + $0x18] sm:$0xff] (!%p189_p8)  ;;  %v299_v33 = vsub.s32 (!%p189_p8), %v296_v29, %v254_v31  ;;  %v306_v36 = vsub.s32 (!%p189_p8), %v303_v30, %v254_v31  ;;  %v313_v41 = vsub.s32 (!%p189_p8), %v310_v35, %v254_v31 }
  0x20   : > { %493 = vtanh.f32 (!%p189_p8), %v229_v11  ;;  %v442_v4 = vld [vmem:[%s636_s1 + $0x1] ss:$0 sm:$0xff] (!%p189_p8) }
  0x21   : > { %495 = vtanh.f32 %v234_v12  ;;  %v267_v56 = vld [vmem:[#allocation3] sm:$0x3]  ;;  %s645_s11 = smov (!%p216_p9, %s533_s11), 1 }
  0x22   : > { %497 = vtanh.f32 %v230_v13  ;;  %v244_v63 = vld [vmem:[#allocation2] sm:$0x3]  ;;  %s441_s30 = sshll.u32 %s645_s11, 1 }
  0x23   : > { %499 = vtanh.f32 %v235_v14  ;;  %s219_s7 = scalar_lea.vmem %s637_s2, %s441_s30 }
  0x24   : > { %501 = vtanh.f32 %v231_v15 }
  0x27   : > { %v488_v16 = vpop.eup %487 }
  0x28   : > { %v490_v17 = vpop.eup %489  ;;  %276 = vadd.xlane.f32.xlu1 %v488_v16 }
  0x29   : > { %v492_v18 = vpop.eup %491  ;;  %268 = vadd.xlane.f32.xlu0 %v490_v17 }
  0x2a   : > { %v494_v19 = vpop.eup %493 }
  0x2b   : > { %v496_v20 = vpop.eup %495 }
  0x2c   : > { %278 = vadd.xlane.f32.xlu1 %v492_v18  ;;  %v498_v21 = vpop.eup %497 }
  0x2d   : > { %270 = vadd.xlane.f32.xlu0 %v494_v19  ;;  %v500_v22 = vpop.eup %499 }
  0x2e   : > { %v502_v23 = vpop.eup %501 }
  0x30   : > { %280 = vadd.xlane.f32.xlu1 %v496_v20 }
  0x31   : > { %272 = vadd.xlane.f32.xlu0 %v498_v21 }
  0x34   : > { %282 = vadd.xlane.f32.xlu1 %v500_v22 }
  0x35   : > { %274 = vadd.xlane.f32.xlu0 %v502_v23 }
  0x38   : > { %247 = vadd.xlane.f32.xlu1 %v232_v8  ;;  %v443_v8 = vld [vmem:[%s636_s1] ss:$0 sm:$0xff] }
  0x39   : > { %245 = vadd.xlane.f32.xlu0 %v228_v9 }
  0xb5   : > { %v277_v27 = vpop.xlane.xlu1 %276 }
  0xb6   : > { %v269_v28 = vpop.xlane.xlu0 %268  ;;  %v320_v44 = vrot.slane %v277_v27, %v255_v37 }
  0xb7   : > { %v295_v46 = vrot.slane %v269_v28, %v255_v37 }
  0xb9   : > { %v279_v32 = vpop.xlane.xlu1 %278 }
  0xba   : > { %v271_v34 = vpop.xlane.xlu0 %270  ;;  %v324_v39 = vrot.slane %v279_v32, %v299_v33 }
  0xbb   : > { %v300_v42 = vrot.slane %v271_v34, %v299_v33 }
  0xbc   : > { %v325_v48 = vsel %vm301_vm2, %v324_v39, %v320_v44 }
  0xbd   : > { %v281_v38 = vpop.xlane.xlu1 %280  ;;  %v302_v51 = vsel %vm301_vm2, %v300_v42, %v295_v46 }
  0xbe   : > { %v273_v40 = vpop.xlane.xlu0 %272  ;;  %v329_v43 = vrot.slane %v281_v38, %v306_v36 }
  0xbf   : > { %v307_v45 = vrot.slane %v273_v40, %v306_v36 }
  0xc0   : > { %v330_v52 = vsel %vm308_vm3, %v329_v43, %v325_v48 }
  0xc1   : > { %v283_v47 = vpop.xlane.xlu1 %282  ;;  %v309_v54 = vsel %vm308_vm3, %v307_v45, %v302_v51 }
  0xc2   : > { %v334_v49 = vrot.slane %v283_v47, %v313_v41  ;;  %v275_v50 = vpop.xlane.xlu0 %274 }
  0xc3   : > { %v314_v53 = vrot.slane %v275_v50, %v313_v41 }
  0xc4   : > { %v335_v55 = vsel %vm315_vm4, %v334_v49, %v330_v52 }
  0xc5   : > { %v316_v57 = vsel %vm315_vm4, %v314_v53, %v309_v54  ;;  %v248_v58 = vpop.xlane.xlu1 %247 }
  0xc6   : > { %v336_v59 = vsel %vm261_vm5, %v335_v55, %v316_v57  ;;  %v260_v60 = vrot.slane %v248_v58, %v255_v37  ;;  %v246_v61 = vpop.xlane.xlu0 %245 }
  0xc7   : > { %v338_v62 = vadd.f32 %v336_v59, %v267_v56  ;;  %v256_v0 = vrot.slane %v246_v61, %v255_v37 }
  0xc9   : > { %340 = vst.msk [vmem:[#allocation3] sm:$0x3] %vm226_vm0, %v338_v62  ;;  %v262_v1 = vsel %vm261_vm5, %v260_v60, %v256_v0 }
  0xca   : > { %v264_v2 = vadd.f32 %v262_v1, %v244_v63 }
  0xcc   : > { %266 = vst.msk [vmem:[#allocation2] sm:$0x3] %vm224_vm1, %v264_v2 }
  0xd0   : > { %v345_v3 = vld [vmem:[#allocation3] sm:$0x3] }
  0xd1   : > { %v349_v6 = vsel %vm348_vm6, %v345_v3, 0.0 }
  0xd3   : > { %v344_v5 = vld [vmem:[#allocation2] sm:$0x3] }
  0xd4   : > { %v347_v7 = vsel %vm346_vm7, %v344_v5, 0.0 }
  0xd5   : > { %v351_v9 = vsel %vm350_vm8, %v347_v7, %v349_v6 }
  0xd6   : > { %v357_v10 = vmul.f32 %v442_v4, %v351_v9 }
  0xd8   : > { %v363_v11 = vadd.f32 %v443_v8, %v357_v10 }
  0xda   : > { %364 = vst [vmem:[%s219_s7] sm:$0x3] %v363_v11 }
  0xdb PF: > { %s12_s13 = sadd.s32 1, %s541_s13   ;;  %s638_s9 = smov %s529_s10 }
  0xdc   : > { %p9_p10 = scmp.ge.s32.totalorder %s12_s13, 4   ;;  %s639_s10 = smov %s594_s17 }
  0xdd   : > { %s640_s11 = smov %s537_s12  ;;  %s641_s12 = smov %s643_s14 }
  0xde   :  { %11 = sbr.rel (!%p9_p10) target bundleno = 3 (0x3), region = 109 }

</bundles_post_ra>
